<compile_context>
chip_gen: v6e
topology: v6e:2x2x1
jax: 0.10.0
libtpu: 0.0.40
codegen_flags: <defaults>
</compile_context>

<pallas_src>
import jax
import jax.numpy as jnp
from jax.experimental import pallas as pl
from jax.experimental.pallas import tpu as pltpu


def _make_angle_loss_kernel(lamb: float, gamma: float):
    scale = 1.0 / (1.0 + lamb)

    def kernel(cos_ref, phi_ref, tgt_ref, out_ref):
        cos = cos_ref[...].astype(jnp.float32)          # (tile_n, C)
        phi = phi_ref[...].astype(jnp.float32)          # (tile_n, C)
        tgt = tgt_ref[...]                              # (tile_n, 1) int32

        tn, c = cos.shape
        col = jax.lax.broadcasted_iota(jnp.int32, (tn, c), 1)
        one_hot = col == tgt                            # scatter_(1, target, 1)

        # A-Softmax blend, only touching the target column:
        #   out[target] = cos - cos/(1+lamb) + phi/(1+lamb)
        out = cos + jnp.where(one_hot, (phi - cos) * scale, 0.0)

        # log-softmax statistics; never materialize the full log_softmax matrix
        m = jnp.max(out, axis=1, keepdims=True)                         # (tn,1)
        lse = jnp.log(jnp.sum(jnp.exp(out - m), axis=1, keepdims=True)) # (tn,1)
        tgt_logit = jnp.sum(jnp.where(one_hot, out, 0.0), axis=1,
                            keepdims=True)                              # (tn,1)
        logpt = tgt_logit - m - lse                                     # (tn,1)

        # focal weighting, specialized on the (static) gamma
        if gamma == 0.0:
            loss = -logpt                               # (1-pt)**0 == 1
        else:
            pt = jnp.exp(logpt)
            w = jnp.maximum(1.0 - pt, 0.0)              # guard pt ~ 1.0 rounding
            if float(gamma).is_integer() and 1.0 <= gamma <= 4.0:
                base = w
                for _ in range(int(gamma) - 1):         # repeated multiplies
                    w = w * base
            else:
                w = w ** gamma
            loss = -w * logpt

        out_ref[...] = loss                             # per-row loss (tile_n,1)

    return kernel


def angle_loss(cos_theta, phi_theta, target, *, gamma=0.0, it=1,
               lambda_min=5.0, lambda_max=1500.0, tile_n=None):
    """Pallas implementation of AngleLoss.forward for a single call.

    cos_theta, phi_theta: (N, C) float arrays (f32 or bf16)
    target:               (N,)   int array of class indices
    Returns a scalar float32 loss.
    """
    n, c = cos_theta.shape
    lamb = max(lambda_min, lambda_max / (1.0 + 0.1 * it))
    tgt = jnp.asarray(target).reshape(n, 1).astype(jnp.int32)

    itemsize = max(jnp.dtype(cos_theta.dtype).itemsize,
                   jnp.dtype(phi_theta.dtype).itemsize)

    # Per-generation VMEM capacity (v7x: 64 MiB, v5e/v6e: 128 MiB).
    try:
        vmem_cap = int(pltpu.get_tpu_info().vmem_capacity_bytes)
    except Exception:
        vmem_cap = 64 * 1024 * 1024                      # conservative fallback

    if tile_n is None:
        # 2 inputs x 2 pipeline buffers of (tile_n, C) must fit ~half of VMEM.
        budget = vmem_cap // 2
        t = (budget // (4 * c * itemsize)) // 8 * 8
        t = max(8, min(512, t))
        tile_n = n if n <= t else t                      # full-extent if it fits

    num_tiles = pl.cdiv(n, tile_n)

    needed = 4 * tile_n * c * itemsize + 4 * tile_n * 8 + (2 << 20)
    vmem_limit = int(min(max(needed, 16 * 1024 * 1024), vmem_cap * 3 // 4))

    kernel = _make_angle_loss_kernel(lamb, float(gamma))

    per_row = pl.pallas_call(
        kernel,
        out_shape=jax.ShapeDtypeStruct((n, 1), jnp.float32),
        grid_spec=pltpu.PrefetchScalarGridSpec(
            num_scalar_prefetch=0,
            grid=(num_tiles,),
            in_specs=[
                pl.BlockSpec((tile_n, c), lambda i: (i, 0)),
                pl.BlockSpec((tile_n, c), lambda i: (i, 0)),
                pl.BlockSpec((tile_n, 1), lambda i: (i, 0)),
            ],
            out_specs=pl.BlockSpec((tile_n, 1), lambda i: (i, 0)),
        ),
        compiler_params=pltpu.CompilerParams(
            dimension_semantics=("parallel",),
            vmem_limit_bytes=vmem_limit,
        ),
    )(cos_theta, phi_theta, tgt)

    # Global mean over the true batch size (ragged tiles already masked by
    # Pallas's bounded output writeback).
    return jnp.mean(per_row)


def _angle_loss_ref(cos_theta, phi_theta, target, *, gamma=0.0, it=1,
                    lambda_min=5.0, lambda_max=1500.0):
    """Pure-JAX reference mirroring the PyTorch semantics."""
    n, c = cos_theta.shape
    lamb = max(lambda_min, lambda_max / (1.0 + 0.1 * it))
    one_hot = jax.nn.one_hot(target, c, dtype=jnp.float32).astype(bool)
    cos = cos_theta.astype(jnp.float32)
    phi = phi_theta.astype(jnp.float32)
    scale = 1.0 / (1.0 + lamb)
    out = jnp.where(one_hot, cos - cos * scale + phi * scale, cos)
    logsm = jax.nn.log_softmax(out, axis=1)
    logpt = jnp.take_along_axis(logsm, target.reshape(-1, 1), axis=1).reshape(-1)
    pt = jnp.exp(logpt)
    return jnp.mean(-((1.0 - pt) ** gamma) * logpt)


if __name__ == "__main__":
    key = jax.random.PRNGKey(0)
    k1, k2, k3, k4, k5, k6 = jax.random.split(key, 6)

    # --- 1. base case: f32, gamma=0, single tile -----------------------------
    N, C = 8, 32
    cos_theta = jax.random.uniform(k1, (N, C), jnp.float32, minval=-1.0, maxval=1.0)
    phi_theta = jax.random.uniform(k2, (N, C), jnp.float32, minval=-2.0, maxval=1.0)
    target = jax.random.randint(k3, (N,), 0, C, dtype=jnp.int32)

    loss = jax.block_until_ready(angle_loss(cos_theta, phi_theta, target, gamma=0.0, it=1))
    ref = _angle_loss_ref(cos_theta, phi_theta, target, gamma=0.0, it=1)
    assert jnp.allclose(loss, ref, rtol=1e-5, atol=1e-5), (loss, ref)

    # --- 2. specialized integer-gamma (focal) path ----------------------------
    loss2 = jax.block_until_ready(angle_loss(cos_theta, phi_theta, target, gamma=2.0, it=1))
    ref2 = _angle_loss_ref(cos_theta, phi_theta, target, gamma=2.0, it=1)
    assert jnp.allclose(loss2, ref2, rtol=1e-5, atol=1e-5), (loss2, ref2)

    # --- 3. bf16 inputs (cast to f32 inside the kernel) ------------------------
    N3, C3 = 16, 128
    cos3 = jax.random.uniform(k4, (N3, C3), jnp.float32, -1.0, 1.0).astype(jnp.bfloat16)
    phi3 = jax.random.uniform(k5, (N3, C3), jnp.float32, -2.0, 1.0).astype(jnp.bfloat16)
    tgt3 = jax.random.randint(k6, (N3,), 0, C3, dtype=jnp.int32)
    loss3 = jax.block_until_ready(angle_loss(cos3, phi3, tgt3, gamma=0.0, it=1))
    ref3 = _angle_loss_ref(cos3.astype(jnp.float32), phi3.astype(jnp.float32), tgt3,
                           gamma=0.0, it=1)
    assert jnp.allclose(loss3, ref3, rtol=1e-3, atol=1e-3), (loss3, ref3)

    # --- 4. multi-tile grid with a ragged last tile ---------------------------
    N4, C4 = 20, 128
    cos4 = jax.random.uniform(k4, (N4, C4), jnp.float32, -1.0, 1.0)
    phi4 = jax.random.uniform(k5, (N4, C4), jnp.float32, -2.0, 1.0)
    tgt4 = jax.random.randint(k6, (N4,), 0, C4, dtype=jnp.int32)
    loss4 = jax.block_until_ready(angle_loss(cos4, phi4, tgt4, gamma=0.0, it=1, tile_n=8))
    ref4 = _angle_loss_ref(cos4, phi4, tgt4, gamma=0.0, it=1)
    assert jnp.allclose(loss4, ref4, rtol=1e-5, atol=1e-5), (loss4, ref4)

    print("KERNEL_OK")
</pallas_src>

<mosaic_0001>
module attributes {stable_mosaic.version = 11 : i64} {
  func.func @kernel(%arg0: i32, %arg1: memref<8x32xf32, #tpu.memory_space<vmem>>, %arg2: memref<8x32xf32, #tpu.memory_space<vmem>>, %arg3: memref<8x1xi32, #tpu.memory_space<vmem>>, %arg4: memref<8x1xf32, #tpu.memory_space<vmem>>) attributes {dimension_semantics = [#tpu.dimension_semantics<parallel>], iteration_bounds = array<i64: 1>, scalar_prefetch = 0 : i64, scratch_operands = 0 : i64, tpu.core_type = #tpu.core_type<tc>, window_params = [{transform_indices = @transform_0, window_bounds = array<i64: 8, 32>}, {transform_indices = @transform_1, window_bounds = array<i64: 8, 32>}, {transform_indices = @transform_2, window_bounds = array<i64: 8, 1>}, {transform_indices = @transform_3, window_bounds = array<i64: 8, 1>}]} {
    %c0 = arith.constant 0 : index
    %c0_0 = arith.constant 0 : index
    %0 = vector.load %arg1[%c0, %c0_0] : memref<8x32xf32, #tpu.memory_space<vmem>>, vector<8x32xf32>
    %c0_1 = arith.constant 0 : index
    %c0_2 = arith.constant 0 : index
    %1 = vector.load %arg2[%c0_1, %c0_2] : memref<8x32xf32, #tpu.memory_space<vmem>>, vector<8x32xf32>
    %c0_3 = arith.constant 0 : index
    %c0_4 = arith.constant 0 : index
    %2 = vector.load %arg3[%c0_3, %c0_4] : memref<8x1xi32, #tpu.memory_space<vmem>>, vector<8x1xi32>
    %3 = tpu.iota {dimensions = array<i32: 1>} : vector<8x32xi32>
    %4 = vector.broadcast %2 : vector<8x1xi32> to vector<8x32xi32>
    %5 = arith.cmpi eq, %3, %4 : vector<8x32xi32>
    %6 = arith.subf %1, %0 : vector<8x32xf32>
    %cst = arith.constant 7.327960e-04 : f32
    %7 = vector.broadcast %cst : f32 to vector<8x32xf32>
    %8 = arith.mulf %6, %7 : vector<8x32xf32>
    %cst_5 = arith.constant 0.000000e+00 : f32
    %9 = vector.broadcast %cst_5 : f32 to vector<8x32xf32>
    %10 = arith.select %5, %8, %9 : vector<8x32xi1>, vector<8x32xf32>
    %11 = arith.addf %0, %10 : vector<8x32xf32>
    %cst_6 = arith.constant dense<0xFF800000> : vector<8xf32>
    %12 = vector.multi_reduction <maximumf>, %11, %cst_6 [1] : vector<8x32xf32> to vector<8xf32>
    %13 = vector.shape_cast %12 : vector<8xf32> to vector<8x1xf32>
    %14 = vector.broadcast %13 : vector<8x1xf32> to vector<8x32xf32>
    %15 = arith.subf %11, %14 : vector<8x32xf32>
    %16 = math.exp %15 : vector<8x32xf32>
    %cst_7 = arith.constant dense<0.000000e+00> : vector<8xf32>
    %17 = vector.multi_reduction <add>, %16, %cst_7 [1] : vector<8x32xf32> to vector<8xf32>
    %18 = vector.shape_cast %17 : vector<8xf32> to vector<8x1xf32>
    %19 = math.log %18 : vector<8x1xf32>
    %cst_8 = arith.constant 0.000000e+00 : f32
    %20 = vector.broadcast %cst_8 : f32 to vector<8x32xf32>
    %21 = arith.select %5, %11, %20 : vector<8x32xi1>, vector<8x32xf32>
    %cst_9 = arith.constant dense<0.000000e+00> : vector<8xf32>
    %22 = vector.multi_reduction <add>, %21, %cst_9 [1] : vector<8x32xf32> to vector<8xf32>
    %23 = vector.shape_cast %22 : vector<8xf32> to vector<8x1xf32>
    %24 = arith.subf %23, %13 : vector<8x1xf32>
    %25 = arith.subf %24, %19 : vector<8x1xf32>
    %cst_10 = arith.constant 0.000000e+00 : f32
    %26 = vector.broadcast %cst_10 : f32 to vector<8x1xf32>
    %27 = arith.subf %26, %25 : vector<8x1xf32>
    %c0_11 = arith.constant 0 : index
    %c0_12 = arith.constant 0 : index
    %28 = vector.load %arg4[%c0_11, %c0_12] : memref<8x1xf32, #tpu.memory_space<vmem>>, vector<8x1xf32>
    tpu.vector_store %arg4[%c0_11, %c0_12], %27 {strides = array<i32>} : memref<8x1xf32, #tpu.memory_space<vmem>>, vector<8x1xf32>,
    return
  }
  func.func @transform_0(%arg0: i32) -> (i32, i32) {
    %c0_i32 = arith.constant 0 : i32
    %c0_i32_0 = arith.constant 0 : i32
    return %arg0, %c0_i32 : i32, i32
  }
  func.func @transform_1(%arg0: i32) -> (i32, i32) {
    %c0_i32 = arith.constant 0 : i32
    %c0_i32_0 = arith.constant 0 : i32
    return %arg0, %c0_i32 : i32, i32
  }
  func.func @transform_2(%arg0: i32) -> (i32, i32) {
    %c0_i32 = arith.constant 0 : i32
    %c0_i32_0 = arith.constant 0 : i32
    return %arg0, %c0_i32 : i32, i32
  }
  func.func @transform_3(%arg0: i32) -> (i32, i32) {
    %c0_i32 = arith.constant 0 : i32
    %c0_i32_0 = arith.constant 0 : i32
    return %arg0, %c0_i32 : i32, i32
  }
}

</mosaic_0001>

<bundles_post_ra>
// kernel: tpu_custom_call.1
= control target key start
LH: loop header
LB: loop body
LE: loop exit
PB: predicated region body
PF: predicated region fallthrough
CT: control target
= control target key end

     0   :  { %8 = vsyncpa [#allocation3], 0  ;;  %s94_s12 = smov [#allocation2]   ;;  %s128_s0 = inlined_call_operand.vmem [shape: f32[8,32], index: 0, kind: input, shape index: {}]   ;;  %s129_s1 = inlined_call_operand.hbm [shape: f32[8,32], index: 1, kind: input, shape index: {}]   ;;  %s130_s2 = inlined_call_operand.vmem [shape: s32[8,1], index: 2, kind: input, shape index: {}]   ;;  %s131_s3 = inlined_call_operand.vmem [shape: f32[8,1], index: 3, kind: output, shape index: {}]  }
   0x1   :  { %s17_s13 = sshll.u32 %s94_s12, 4  ;;  %s18_s13 = int_to_ptr.vmem [resolvable:$true] %s17_s13 }
   0x2   :  { %s80_s14 = scalar_lea.vmem %s18_s13, 128  ;;  %p85_p1 = scmp.lt.s32.totalorder %s18_s13, %s18_s13 }
   0x3   :  { %p81_p0 = scmp.ne.s32.totalorder %s18_s13, %s80_s14  ;;  %p86_p2 = scmp.lt.s32.totalorder %s80_s14, %s80_s14 }
   0x5   :  { %p87_p3 = por %p86_p2, %p85_p1 }
   0x7   :  { %p88_p4 = pnand %p87_p3, %p81_p0 }
   0x9   :  { %91 = shalt.err (!%p88_p4)
}
   0xa   :  { %20 = dma.hbm_to_vmem [thread:$0]  %s129_s1, 128, %s18_s13, [#allocation3]  }
   0xb   :  { %92 = dma.done.wait [#allocation3], 128  }
   0xc   :  { %93 = vsyncadd [#allocation3], 4294967168  ;;  %v95_v0 = vmov 0   ;;  %v28_v1 = vld [vmem:[%s130_s2] sm:$0xff]  ;;  %v29_v4 = vlaneseq  ;;  %vm39_vm1 = vcmask 261120   ;;  %vm58_vm2 = vcmask 7168  }
   0xd   :  { %67 = vset.pattern.permute.xlu0 %v95_v0  ;;  %v26_v2 = vld [vmem:[%s128_s0] sm:$0xff] }
   0xe   :  { %32 = vperm.xlu0 %67, %v28_v1   ;;  %v27_v3 = vld [vmem:[#allocation2] sm:$0xff]  ;;  %v30_v6 = vand.u32 127, %v29_v4 }
   0xf   :  { %v35_v5 = vsub.f32 %v27_v3, %v26_v2 }
  0x11   :  { %v36_v7 = vmul.f32 0.000732796, %v35_v5 }
  0x89   :  { %v33_v8 = vpop.permute.xlu0 %32 }
  0x8a   :  { %vm34_vm0 = vcmp.eq.s32.totalorder %v30_v6, %v33_v8 }
  0x8b   :  { %v37_v9 = vsel %vm34_vm0, %v36_v7, 0.0 }
  0x8c   :  { %v38_v10 = vadd.f32 %v37_v9, %v26_v2 }
  0x8e   :  { %v40_v11 = vsel %vm39_vm1, %v38_v10, -inf  ;;  %v51_v17 = vsel %vm34_vm0, %v38_v10, 0.0 }
  0x8f   :  { %41 = vmax.xlane.f32.xlu0 %v40_v11  ;;  %v52_v18 = vsel %vm39_vm1, %v51_v17, 0.0 }
 0x118   :  { %v42_v12 = vpop.xlane.xlu0 %41 }
 0x119   :  { %v43_v13 = vsub.f32 %v38_v10, %v42_v12 }
 0x11b   :  { %v44_v14 = vmul.f32 1.442695, %v43_v13 }
 0x11d   :  { %68 = vpow2.f32 %v44_v14 }
 0x12a   :  { %v69_v15 = vpop.eup %68 }
 0x12b   :  { %v46_v16 = vsel %vm39_vm1, %v69_v15, 0.0 }
 0x12c   :  { %47 = vadd.xlane.f32.xlu1 %v46_v16 }
 0x130   :  { %53 = vadd.xlane.f32.xlu1 %v52_v18 }
 0x1b5   :  { %v48_v19 = vpop.xlane.xlu1 %47 }
 0x1b6   :  { %70 = vlog2.f32 %v48_v19 }
 0x1b9   :  { %v54_v20 = vpop.xlane.xlu1 %53 }
 0x1ba   :  { %v55_v23 = vsub.f32 %v54_v20, %v42_v12 }
 0x1c3   :  { %v71_v21 = vpop.eup %70 }
 0x1c4   :  { %v50_v22 = vmul.f32 0.6931472, %v71_v21 }
 0x1c6   :  { %v56_v24 = vsub.f32 %v55_v23, %v50_v22 }
 0x1c8   :  { %v57_v25 = vsub.f32 0.0, %v56_v24 }
 0x1ca   :  { %59 = vst.msk [vmem:[%s131_s3] sm:$0xff] %vm58_vm2, %v57_v25 }
 0x1cb   :  { %64 = vsyncpa [#allocation3], 1 }

</bundles_post_ra>
